<compile_context>
chip_gen: v6e
topology: v6e:2x2x1
jax: 0.10.0
libtpu: 0.0.40
codegen_flags: <defaults>
</compile_context>

<pallas_src>
import functools

import jax
import jax.numpy as jnp
from jax import lax
from jax.experimental import pallas as pl
from jax.experimental.pallas import tpu as pltpu


# ----------------------------------------------------------------------------
# Fused kernel: MaxPool2x2 + (Conv3x3 + folded-BN + ReLU) x 2, whole batch.
# ----------------------------------------------------------------------------
def _encoder_block_kernel(xq_ref, w1_ref, b1_ref, w2_ref, b2_ref, o_ref, *, ho):
    # xq_ref: (4, M, K1)        4 pool parities, M = N*HO, K1 = WO*Cin
    # w1_ref: (3, K1, KO)       per-kernel-row matmul weights (BN folded)
    # b1_ref: (1, KO)           folded bias (conv bias + BN shift), KO = WO*Cout
    # w2_ref: (3*KO, KO)        row-stacked weight for the single-dot conv2
    # b2_ref: (1, KO)
    # o_ref : (M, KO)           lane-dense output

    x = xq_ref[...]                                           # (4, M, K1)

    # ---- MaxPool2d(2, 2): elementwise max over the four parity slabs -------
    p = jnp.maximum(jnp.maximum(x[0], x[1]),
                    jnp.maximum(x[2], x[3]))                  # (M, K1)

    def shifted(a):
        # Per-image row shifts (+ height zero padding).  Rolls act over the
        # whole M = N*HO sublane axis; masks use (row % HO) so rows never
        # leak across image boundaries.
        m = a.shape[0]
        rows = lax.broadcasted_iota(jnp.int32, a.shape, 0) % ho
        up = jnp.where(rows >= 1,
                       pltpu.roll(a, shift=1, axis=0), 0.0)        # row h-1
        down = jnp.where(rows <= ho - 2,
                         pltpu.roll(a, shift=m - 1, axis=0), 0.0)  # row h+1
        return up, down

    # ---- conv1: 3-dot accumulator chain (per-tap K = WO*Cin = 32) ----------
    up, down = shifted(p)
    acc = jnp.dot(up, w1_ref[0], preferred_element_type=jnp.float32)
    acc = acc + jnp.dot(p, w1_ref[1], preferred_element_type=jnp.float32)
    acc = acc + jnp.dot(down, w1_ref[2], preferred_element_type=jnp.float32)
    h1 = jnp.maximum(acc + b1_ref[...], 0.0)                  # (M, KO), in VMEM

    # ---- conv2: single MXU matmul, [up, mid, down] lane-concatenated -------
    up2, down2 = shifted(h1)
    a3 = jnp.concatenate([up2, h1, down2], axis=-1)           # (M, 3*KO)
    acc2 = jnp.dot(a3, w2_ref[...], preferred_element_type=jnp.float32)
    h2 = jnp.maximum(acc2 + b2_ref[...], 0.0)                 # (M, KO)

    o_ref[...] = h2.astype(o_ref.dtype)


def _encoder_block_pallas(xq, w1r, b1r, w2s, b2s, *, ho):
    four, m, k1 = xq.shape
    ko = b1r.shape[1]
    assert four == 4 and m % ho == 0

    flops = 3 * 2 * m * k1 * ko + 2 * m * (3 * ko) * ko
    bytes_accessed = 4 * (xq.size + w1r.size + b1r.size + w2s.size +
                          b2s.size + m * ko)

    return pl.pallas_call(
        functools.partial(_encoder_block_kernel, ho=ho),
        out_shape=jax.ShapeDtypeStruct((m, ko), jnp.float32),
        grid=(1,),
        in_specs=[
            pl.BlockSpec((4, m, k1), lambda i: (0, 0, 0)),
            pl.BlockSpec(w1r.shape, lambda i: (0, 0, 0)),
            pl.BlockSpec(b1r.shape, lambda i: (0, 0)),
            pl.BlockSpec(w2s.shape, lambda i: (0, 0)),
            pl.BlockSpec(b2s.shape, lambda i: (0, 0)),
        ],
        out_specs=pl.BlockSpec((m, ko), lambda i: (0, 0)),
        compiler_params=pltpu.CompilerParams(
            dimension_semantics=("arbitrary",)),
        cost_estimate=pl.CostEstimate(flops=flops, transcendentals=0,
                                      bytes_accessed=bytes_accessed),
    )(xq, w1r, b1r, w2s, b2s)


# ----------------------------------------------------------------------------
# Parameter preparation (done once, outside the jitted forward):
# BN folding + re-layout of the conv weights for the row-matmul kernel.
# ----------------------------------------------------------------------------
def _fold_bn(conv_bias, gamma, beta, mean, var, eps=1e-5):
    scale = gamma / jnp.sqrt(var + eps)
    bias = (conv_bias - mean) * scale + beta
    return scale, bias


def _row_conv_weight(w_hwio, w_out):
    """(KH, KW, Cin, Cout) -> (KH, w_out*Cin, w_out*Cout) with the horizontal
    taps and width zero-padding folded in:
      out[dy, wi*Cin+ci, wo*Cout+co] = w[dy, wi-wo+1, ci, co]  (0 if tap OOB)
    """
    kh, kw, cin, cout = w_hwio.shape
    shifts = jnp.stack([jnp.eye(w_out, w_out, k=1 - dx, dtype=w_hwio.dtype)
                        for dx in range(kw)])                 # (KW, wi, wo)
    big = jnp.einsum("dab,ydio->yaibo", shifts, w_hwio)       # (KH,wi,Cin,wo,Cout)
    return big.reshape(kh, w_out * cin, w_out * cout)


def prepare_params(params, w_out):
    s1, bb1 = _fold_bn(params["b1"], params["gamma1"], params["beta1"],
                       params["mean1"], params["var1"])
    s2, bb2 = _fold_bn(params["b2"], params["gamma2"], params["beta2"],
                       params["mean2"], params["var2"])
    cout = params["w1"].shape[-1]
    ko = w_out * cout
    w1r = _row_conv_weight(params["w1"] * s1, w_out)          # (3, WO*Cin, KO)
    w2r = _row_conv_weight(params["w2"] * s2, w_out)          # (3, KO, KO)
    return {
        "w1r": w1r.astype(jnp.float32),
        # conv2 weight stacked along K for the single-dot form: rows are
        # [dy=0 (row h-1); dy=1 (row h); dy=2 (row h+1)], matching the
        # in-kernel [up, mid, down] lane-concat order.
        "w2s": w2r.reshape(3 * ko, ko).astype(jnp.float32),
        "b1r": jnp.tile(bb1, (w_out,)).reshape(1, ko).astype(jnp.float32),
        "b2r": jnp.tile(bb2, (w_out,)).reshape(1, ko).astype(jnp.float32),
    }


# ----------------------------------------------------------------------------
# encoder_block forward (first_block=False, dropout=False, reduction_ratio=None)
# ----------------------------------------------------------------------------
def encoder_block_forward(x_nchw, prep, *, as_nchw=True):
    n, c, h, w = x_nchw.shape
    assert h % 2 == 0 and w % 2 == 0
    ho, wo = h // 2, w // 2
    ko = prep["b1r"].shape[1]
    cout = ko // wo
    # NCHW -> pool-parity layout (4, N*HO, WO*Cin): one XLA copy; everything
    # else (pool, both convs, BN, ReLU) happens inside the fused kernel.
    xq = (x_nchw.reshape(n, c, ho, 2, wo, 2)
                 .transpose(3, 5, 0, 2, 4, 1)
                 .reshape(4, n * ho, wo * c))
    out = _encoder_block_pallas(xq, prep["w1r"], prep["b1r"],
                                prep["w2s"], prep["b2r"], ho=ho)  # (N*HO, KO)
    # TODO(synk): reduction_ratio=None path only; the CBAM/BAM/SE attention
    # modules are not defined in the provided source, so the scale_weight
    # branch is not implemented.
    if not as_nchw:
        # Canonical lane-dense inter-layer layout for chaining encoder blocks
        # (avoids the NHWC->NCHW relayout round trip).
        return out.reshape(n, ho, wo * cout)
    return out.reshape(n, ho, wo, cout).transpose(0, 3, 1, 2)     # NCHW


# ----------------------------------------------------------------------------
# Random parameters + pure-JAX reference (for correctness check)
# ----------------------------------------------------------------------------
def make_params(key, ch_in, ch_out):
    ks = jax.random.split(key, 10)
    p = {}
    p["w1"] = jax.random.normal(ks[0], (3, 3, ch_in, ch_out), jnp.float32) * 0.1
    p["b1"] = jax.random.normal(ks[1], (ch_out,), jnp.float32) * 0.1
    p["gamma1"] = 1.0 + 0.1 * jax.random.normal(ks[2], (ch_out,), jnp.float32)
    p["beta1"] = 0.1 * jax.random.normal(ks[3], (ch_out,), jnp.float32)
    p["mean1"] = 0.05 * jax.random.normal(ks[4], (ch_out,), jnp.float32)
    p["var1"] = 1.0 + 0.1 * jax.random.uniform(ks[5], (ch_out,), jnp.float32)

    p["w2"] = jax.random.normal(ks[6], (3, 3, ch_out, ch_out), jnp.float32) * 0.1
    p["b2"] = jax.random.normal(ks[7], (ch_out,), jnp.float32) * 0.1
    p["gamma2"] = 1.0 + 0.1 * jax.random.normal(ks[8], (ch_out,), jnp.float32)
    p["beta2"] = 0.1 * jax.random.normal(ks[9], (ch_out,), jnp.float32)
    p["mean2"] = jnp.zeros((ch_out,), jnp.float32)
    p["var2"] = jnp.ones((ch_out,), jnp.float32)
    return p


def _reference(x_nchw, params):
    x = jnp.transpose(x_nchw, (0, 2, 3, 1))
    x = lax.reduce_window(x, -jnp.inf, lax.max,
                          (1, 2, 2, 1), (1, 2, 2, 1), "VALID")

    def block(x, w, b, g, bt, m, v):
        y = lax.conv_general_dilated(
            x, w, window_strides=(1, 1), padding="SAME",
            dimension_numbers=("NHWC", "HWIO", "NHWC")) + b
        y = g * (y - m) / jnp.sqrt(v + 1e-5) + bt
        return jnp.maximum(y, 0.0)

    h = block(x, params["w1"], params["b1"], params["gamma1"],
              params["beta1"], params["mean1"], params["var1"])
    h = block(h, params["w2"], params["b2"], params["gamma2"],
              params["beta2"], params["mean2"], params["var2"])
    return jnp.transpose(h, (0, 3, 1, 2))


if __name__ == "__main__":
    key = jax.random.PRNGKey(0)
    k_x, k_p = jax.random.split(key)

    N, C_IN, C_OUT, H, W = 2, 4, 32, 16, 16
    x = jax.random.normal(k_x, (N, C_IN, H, W), jnp.float32)
    params = make_params(k_p, C_IN, C_OUT)

    # BN/bias folding + weight re-layout: done once (weights are constant at
    # inference); the jitted forward is then [parity repack, fused kernel,
    # NCHW repack].
    prep = prepare_params(params, W // 2)

    fwd = jax.jit(encoder_block_forward)
    out = jax.block_until_ready(fwd(x, prep))

    ref = _reference(x, params)
    assert out.shape == (N, C_OUT, H // 2, W // 2), out.shape
    assert jnp.allclose(out, ref, rtol=1e-4, atol=1e-4), (
        float(jnp.max(jnp.abs(out - ref))))

    print("KERNEL_OK")
</pallas_src>

<mosaic_0001>
module attributes {stable_mosaic.version = 11 : i64} {
  func.func @_encoder_block_kernel(%arg0: i32, %arg1: memref<4x16x32xf32, #tpu.memory_space<vmem>>, %arg2: memref<3x32x256xf32, #tpu.memory_space<vmem>>, %arg3: memref<1x256xf32, #tpu.memory_space<vmem>>, %arg4: memref<768x256xf32, #tpu.memory_space<vmem>>, %arg5: memref<1x256xf32, #tpu.memory_space<vmem>>, %arg6: memref<16x256xf32, #tpu.memory_space<vmem>>) attributes {dimension_semantics = [#tpu.dimension_semantics<arbitrary>], iteration_bounds = array<i64: 1>, scalar_prefetch = 0 : i64, scratch_operands = 0 : i64, tpu.core_type = #tpu.core_type<tc>, window_params = [{pipeline_mode = #tpu.pipeline_mode<synchronous>, transform_indices = @transform_0, window_bounds = array<i64: 4, 16, 32>}, {pipeline_mode = #tpu.pipeline_mode<synchronous>, transform_indices = @transform_1, window_bounds = array<i64: 3, 32, 256>}, {pipeline_mode = #tpu.pipeline_mode<synchronous>, transform_indices = @transform_2, window_bounds = array<i64: 1, 256>}, {pipeline_mode = #tpu.pipeline_mode<synchronous>, transform_indices = @transform_3, window_bounds = array<i64: 768, 256>}, {pipeline_mode = #tpu.pipeline_mode<synchronous>, transform_indices = @transform_4, window_bounds = array<i64: 1, 256>}, {pipeline_mode = #tpu.pipeline_mode<synchronous>, transform_indices = @transform_5, window_bounds = array<i64: 16, 256>}]} {
    %c0 = arith.constant 0 : index
    %c0_0 = arith.constant 0 : index
    %c0_1 = arith.constant 0 : index
    %0 = vector.load %arg1[%c0, %c0_0, %c0_1] : memref<4x16x32xf32, #tpu.memory_space<vmem>>, vector<4x16x32xf32>
    %1 = vector.extract_strided_slice %0 {offsets = [0, 0, 0], sizes = [1, 16, 32], strides = [1, 1, 1]} : vector<4x16x32xf32> to vector<1x16x32xf32>
    %2 = vector.shape_cast %1 : vector<1x16x32xf32> to vector<16x32xf32>
    %3 = vector.extract_strided_slice %0 {offsets = [1, 0, 0], sizes = [1, 16, 32], strides = [1, 1, 1]} : vector<4x16x32xf32> to vector<1x16x32xf32>
    %4 = vector.shape_cast %3 : vector<1x16x32xf32> to vector<16x32xf32>
    %5 = arith.maximumf %2, %4 : vector<16x32xf32>
    %6 = vector.extract_strided_slice %0 {offsets = [2, 0, 0], sizes = [1, 16, 32], strides = [1, 1, 1]} : vector<4x16x32xf32> to vector<1x16x32xf32>
    %7 = vector.shape_cast %6 : vector<1x16x32xf32> to vector<16x32xf32>
    %8 = vector.extract_strided_slice %0 {offsets = [3, 0, 0], sizes = [1, 16, 32], strides = [1, 1, 1]} : vector<4x16x32xf32> to vector<1x16x32xf32>
    %9 = vector.shape_cast %8 : vector<1x16x32xf32> to vector<16x32xf32>
    %10 = arith.maximumf %7, %9 : vector<16x32xf32>
    %11 = arith.maximumf %5, %10 : vector<16x32xf32>
    %12 = tpu.iota {dimensions = array<i32: 0>} : vector<16x32xi32>
    %c8_i32 = arith.constant 8 : i32
    %c0_i32 = arith.constant 0 : i32
    %13 = arith.cmpi eq, %c8_i32, %c0_i32 : i32
    %c1_i32 = arith.constant 1 : i32
    %14 = arith.select %13, %c1_i32, %c8_i32 : i32
    %15 = vector.broadcast %14 : i32 to vector<16x32xi32>
    %16 = arith.remsi %12, %15 : vector<16x32xi32>
    %c0_i32_2 = arith.constant 0 : i32
    %17 = vector.broadcast %c0_i32_2 : i32 to vector<16x32xi32>
    %18 = arith.cmpi ne, %16, %17 : vector<16x32xi32>
    %c0_i32_3 = arith.constant 0 : i32
    %19 = vector.broadcast %c0_i32_3 : i32 to vector<16x32xi32>
    %20 = arith.cmpi slt, %16, %19 : vector<16x32xi32>
    %c0_i32_4 = arith.constant 0 : i32
    %21 = arith.cmpi slt, %14, %c0_i32_4 : i32
    %22 = vector.broadcast %21 : i1 to vector<16x32xi1>
    %23 = vector.broadcast %22 : vector<16x32xi1> to vector<16x32xi1>
    %24 = arith.xori %20, %23 : vector<16x32xi1>
    %25 = arith.andi %24, %18 : vector<16x32xi1>
    %26 = vector.broadcast %14 : i32 to vector<16x32xi32>
    %27 = arith.addi %16, %26 : vector<16x32xi32>
    %28 = arith.select %25, %27, %16 : vector<16x32xi1>, vector<16x32xi32>
    %c1_i32_5 = arith.constant 1 : i32
    %29 = vector.broadcast %c1_i32_5 : i32 to vector<16x32xi32>
    %30 = arith.cmpi sge, %28, %29 : vector<16x32xi32>
    %c1_i32_6 = arith.constant 1 : i32
    %31 = tpu.dynamic_rotate %11 by %c1_i32_6 dim 0 : vector<16x32xf32>, i32 -> vector<16x32xf32>
    %cst = arith.constant 0.000000e+00 : f32
    %32 = vector.broadcast %cst : f32 to vector<16x32xf32>
    %33 = arith.select %30, %31, %32 : vector<16x32xi1>, vector<16x32xf32>
    %c6_i32 = arith.constant 6 : i32
    %34 = vector.broadcast %c6_i32 : i32 to vector<16x32xi32>
    %35 = arith.cmpi sle, %28, %34 : vector<16x32xi32>
    %c15_i32 = arith.constant 15 : i32
    %36 = tpu.dynamic_rotate %11 by %c15_i32 dim 0 : vector<16x32xf32>, i32 -> vector<16x32xf32>
    %cst_7 = arith.constant 0.000000e+00 : f32
    %37 = vector.broadcast %cst_7 : f32 to vector<16x32xf32>
    %38 = arith.select %35, %36, %37 : vector<16x32xi1>, vector<16x32xf32>
    %c0_8 = arith.constant 0 : index
    %c0_9 = arith.constant 0 : index
    %c0_10 = arith.constant 0 : index
    %39 = vector.load %arg2[%c0_8, %c0_9, %c0_10] : memref<3x32x256xf32, #tpu.memory_space<vmem>>, vector<1x32x256xf32>
    %40 = vector.shape_cast %39 : vector<1x32x256xf32> to vector<32x256xf32>
    %cst_11 = arith.constant dense<0.000000e+00> : vector<16x256xf32>
    %41 = tpu.matmul %33, %40, %cst_11 {dimension_numbers = #tpu.dot_dimension_numbers<[1], [0], [0], [1], [0, 0, 1, 1], [], []>} : vector<16x32xf32>, vector<32x256xf32>, vector<16x256xf32> -> vector<16x256xf32>
    %c1 = arith.constant 1 : index
    %c0_12 = arith.constant 0 : index
    %c0_13 = arith.constant 0 : index
    %42 = vector.load %arg2[%c1, %c0_12, %c0_13] : memref<3x32x256xf32, #tpu.memory_space<vmem>>, vector<1x32x256xf32>
    %43 = vector.shape_cast %42 : vector<1x32x256xf32> to vector<32x256xf32>
    %cst_14 = arith.constant dense<0.000000e+00> : vector<16x256xf32>
    %44 = tpu.matmul %11, %43, %cst_14 {dimension_numbers = #tpu.dot_dimension_numbers<[1], [0], [0], [1], [0, 0, 1, 1], [], []>} : vector<16x32xf32>, vector<32x256xf32>, vector<16x256xf32> -> vector<16x256xf32>
    %45 = arith.addf %41, %44 : vector<16x256xf32>
    %c2 = arith.constant 2 : index
    %c0_15 = arith.constant 0 : index
    %c0_16 = arith.constant 0 : index
    %46 = vector.load %arg2[%c2, %c0_15, %c0_16] : memref<3x32x256xf32, #tpu.memory_space<vmem>>, vector<1x32x256xf32>
    %47 = vector.shape_cast %46 : vector<1x32x256xf32> to vector<32x256xf32>
    %cst_17 = arith.constant dense<0.000000e+00> : vector<16x256xf32>
    %48 = tpu.matmul %38, %47, %cst_17 {dimension_numbers = #tpu.dot_dimension_numbers<[1], [0], [0], [1], [0, 0, 1, 1], [], []>} : vector<16x32xf32>, vector<32x256xf32>, vector<16x256xf32> -> vector<16x256xf32>
    %49 = arith.addf %45, %48 : vector<16x256xf32>
    %c0_18 = arith.constant 0 : index
    %c0_19 = arith.constant 0 : index
    %50 = vector.load %arg3[%c0_18, %c0_19] : memref<1x256xf32, #tpu.memory_space<vmem>>, vector<1x256xf32>
    %51 = vector.broadcast %50 : vector<1x256xf32> to vector<16x256xf32>
    %52 = arith.addf %49, %51 : vector<16x256xf32>
    %cst_20 = arith.constant 0.000000e+00 : f32
    %53 = vector.broadcast %cst_20 : f32 to vector<16x256xf32>
    %54 = arith.maximumf %52, %53 : vector<16x256xf32>
    %55 = tpu.iota {dimensions = array<i32: 0>} : vector<16x256xi32>
    %c8_i32_21 = arith.constant 8 : i32
    %c0_i32_22 = arith.constant 0 : i32
    %56 = arith.cmpi eq, %c8_i32_21, %c0_i32_22 : i32
    %c1_i32_23 = arith.constant 1 : i32
    %57 = arith.select %56, %c1_i32_23, %c8_i32_21 : i32
    %58 = vector.broadcast %57 : i32 to vector<16x256xi32>
    %59 = arith.remsi %55, %58 : vector<16x256xi32>
    %c0_i32_24 = arith.constant 0 : i32
    %60 = vector.broadcast %c0_i32_24 : i32 to vector<16x256xi32>
    %61 = arith.cmpi ne, %59, %60 : vector<16x256xi32>
    %c0_i32_25 = arith.constant 0 : i32
    %62 = vector.broadcast %c0_i32_25 : i32 to vector<16x256xi32>
    %63 = arith.cmpi slt, %59, %62 : vector<16x256xi32>
    %c0_i32_26 = arith.constant 0 : i32
    %64 = arith.cmpi slt, %57, %c0_i32_26 : i32
    %65 = vector.broadcast %64 : i1 to vector<16x256xi1>
    %66 = vector.broadcast %65 : vector<16x256xi1> to vector<16x256xi1>
    %67 = arith.xori %63, %66 : vector<16x256xi1>
    %68 = arith.andi %67, %61 : vector<16x256xi1>
    %69 = vector.broadcast %57 : i32 to vector<16x256xi32>
    %70 = arith.addi %59, %69 : vector<16x256xi32>
    %71 = arith.select %68, %70, %59 : vector<16x256xi1>, vector<16x256xi32>
    %c1_i32_27 = arith.constant 1 : i32
    %72 = vector.broadcast %c1_i32_27 : i32 to vector<16x256xi32>
    %73 = arith.cmpi sge, %71, %72 : vector<16x256xi32>
    %c1_i32_28 = arith.constant 1 : i32
    %74 = tpu.dynamic_rotate %54 by %c1_i32_28 dim 0 : vector<16x256xf32>, i32 -> vector<16x256xf32>
    %cst_29 = arith.constant 0.000000e+00 : f32
    %75 = vector.broadcast %cst_29 : f32 to vector<16x256xf32>
    %76 = arith.select %73, %74, %75 : vector<16x256xi1>, vector<16x256xf32>
    %c6_i32_30 = arith.constant 6 : i32
    %77 = vector.broadcast %c6_i32_30 : i32 to vector<16x256xi32>
    %78 = arith.cmpi sle, %71, %77 : vector<16x256xi32>
    %c15_i32_31 = arith.constant 15 : i32
    %79 = tpu.dynamic_rotate %54 by %c15_i32_31 dim 0 : vector<16x256xf32>, i32 -> vector<16x256xf32>
    %cst_32 = arith.constant 0.000000e+00 : f32
    %80 = vector.broadcast %cst_32 : f32 to vector<16x256xf32>
    %81 = arith.select %78, %79, %80 : vector<16x256xi1>, vector<16x256xf32>
    %82 = tpu.concatenate %76, %54, %81 in 1 : vector<16x256xf32>, vector<16x256xf32>, vector<16x256xf32> -> vector<16x768xf32>
    %c0_33 = arith.constant 0 : index
    %c0_34 = arith.constant 0 : index
    %83 = vector.load %arg4[%c0_33, %c0_34] : memref<768x256xf32, #tpu.memory_space<vmem>>, vector<768x256xf32>
    %cst_35 = arith.constant dense<0.000000e+00> : vector<16x256xf32>
    %84 = tpu.matmul %82, %83, %cst_35 {dimension_numbers = #tpu.dot_dimension_numbers<[1], [0], [0], [1], [0, 0, 1, 1], [], []>} : vector<16x768xf32>, vector<768x256xf32>, vector<16x256xf32> -> vector<16x256xf32>
    %c0_36 = arith.constant 0 : index
    %c0_37 = arith.constant 0 : index
    %85 = vector.load %arg5[%c0_36, %c0_37] : memref<1x256xf32, #tpu.memory_space<vmem>>, vector<1x256xf32>
    %86 = vector.broadcast %85 : vector<1x256xf32> to vector<16x256xf32>
    %87 = arith.addf %84, %86 : vector<16x256xf32>
    %cst_38 = arith.constant 0.000000e+00 : f32
    %88 = vector.broadcast %cst_38 : f32 to vector<16x256xf32>
    %89 = arith.maximumf %87, %88 : vector<16x256xf32>
    %c0_39 = arith.constant 0 : index
    %c0_40 = arith.constant 0 : index
    %90 = vector.load %arg6[%c0_39, %c0_40] : memref<16x256xf32, #tpu.memory_space<vmem>>, vector<16x256xf32>
    tpu.vector_store %arg6[%c0_39, %c0_40], %89 {strides = array<i32>} : memref<16x256xf32, #tpu.memory_space<vmem>>, vector<16x256xf32>,
    return
  }
  func.func @transform_0(%arg0: i32) -> (i32, i32, i32) {
    %c0_i32 = arith.constant 0 : i32
    %c0_i32_0 = arith.constant 0 : i32
    %c0_i32_1 = arith.constant 0 : i32
    %c0_i32_2 = arith.constant 0 : i32
    return %c0_i32, %c0_i32_0, %c0_i32_1 : i32, i32, i32
  }
  func.func @transform_1(%arg0: i32) -> (i32, i32, i32) {
    %c0_i32 = arith.constant 0 : i32
    %c0_i32_0 = arith.constant 0 : i32
    %c0_i32_1 = arith.constant 0 : i32
    %c0_i32_2 = arith.constant 0 : i32
    return %c0_i32, %c0_i32_0, %c0_i32_1 : i32, i32, i32
  }
  func.func @transform_2(%arg0: i32) -> (i32, i32) {
    %c0_i32 = arith.constant 0 : i32
    %c0_i32_0 = arith.constant 0 : i32
    %c0_i32_1 = arith.constant 0 : i32
    return %c0_i32, %c0_i32_0 : i32, i32
  }
  func.func @transform_3(%arg0: i32) -> (i32, i32) {
    %c0_i32 = arith.constant 0 : i32
    %c0_i32_0 = arith.constant 0 : i32
    %c0_i32_1 = arith.constant 0 : i32
    return %c0_i32, %c0_i32_0 : i32, i32
  }
  func.func @transform_4(%arg0: i32) -> (i32, i32) {
    %c0_i32 = arith.constant 0 : i32
    %c0_i32_0 = arith.constant 0 : i32
    %c0_i32_1 = arith.constant 0 : i32
    return %c0_i32, %c0_i32_0 : i32, i32
  }
  func.func @transform_5(%arg0: i32) -> (i32, i32) {
    %c0_i32 = arith.constant 0 : i32
    %c0_i32_0 = arith.constant 0 : i32
    %c0_i32_1 = arith.constant 0 : i32
    return %c0_i32, %c0_i32_0 : i32, i32
  }
}

</mosaic_0001>

<bundles_post_ra>
// kernel: encoder_block_forward.1
= control target key start
LH: loop header
LB: loop body
LE: loop exit
PB: predicated region body
PF: predicated region fallthrough
CT: control target
= control target key end

     0   :  { %v34_v0 = vlaneseq  ;;  %v881_v4 = vmov 0.0   ;;  %vm96_vm0 = vcmask 261120   ;;  %s1731_s1 = inlined_call_operand.vmem [shape: f32[3,32,256], index: 1, kind: input, shape index: {}]   ;;  %s1732_s0 = inlined_call_operand.vmem [shape: f32[4,16,32], index: 0, kind: input, shape index: {}]   ;;  %s1733_s3 = inlined_call_operand.vmem [shape: f32[768,256], index: 3, kind: input, shape index: {}]   ;;  %s1734_s2 = inlined_call_operand.vmem [shape: f32[1,256], index: 2, kind: input, shape index: {}]   ;;  %s1735_s4 = inlined_call_operand.vmem [shape: f32[1,256], index: 4, kind: input, shape index: {}]   ;;  %s1736_s5 = inlined_call_operand.vmem [shape: f32[16,256], index: 5, kind: output, shape index: {}]  }
   0x1   :  { %v857_v1 = vld [vmem:[%s1731_s1 + $0x78] sm:$0xff]  ;;  %v856_v2 = vld [vmem:[%s1731_s1 + $0x70] sm:$0xff]  ;;  %v855_v3 = vld [vmem:[%s1731_s1 + $0x68] sm:$0xff]  ;;  %167 = vmatprep.mubr.f32.mxu0 %v881_v4 }
   0x2   :  { %127 = vmatprep.subr.mxu0 %v857_v1  ;;  %v854_v5 = vld [vmem:[%s1731_s1 + $0x60] sm:$0xff]  ;;  %v853_v6 = vld [vmem:[%s1731_s1 + $0x58] sm:$0xff]  ;;  %v852_v7 = vld [vmem:[%s1731_s1 + $0x50] sm:$0xff]  ;;  %v943_v12 = vshrl.u32 %v34_v0, 7 }
   0x3   :  { %128 = vmatpush1.msra.mxu0 %v856_v2  ;;  %v20_v8 = vld [vmem:[%s1732_s0] sm:$0xff]  ;;  %v22_v9 = vld [vmem:[%s1732_s0 + $0x10] sm:$0xff]  ;;  %v851_v13 = vld [vmem:[%s1731_s1 + $0x48] sm:$0xff] }
   0x4   :  { %129 = vmatprep.subr.mxu0 %v855_v3  ;;  %v24_v10 = vld [vmem:[%s1732_s0 + $0x20] sm:$0xff]  ;;  %v26_v11 = vld [vmem:[%s1732_s0 + $0x30] sm:$0xff]  ;;  %v28_v14 = vmax.f32 %v20_v8, %v22_v9  ;;  %v21_v17 = vld [vmem:[%s1732_s0 + $0x8] sm:$0xff]  ;;  %v41_v26 = vand.u32 7, %v943_v12  ;;  %v973_v27 = vadd.s32 8, %v943_v12  ;;  %vm65_vm1 = vcmp.lt.s32.totalorder %v943_v12, 1 }
   0x5   :  { %130 = vmatpush1.msra.mxu0 %v854_v5  ;;  %v30_v15 = vmax.f32 %v24_v10, %v26_v11  ;;  %v850_v16 = vld [vmem:[%s1731_s1 + $0x40] sm:$0xff]  ;;  %v23_v18 = vld [vmem:[%s1732_s0 + $0x18] sm:$0xff]  ;;  %v25_v21 = vld [vmem:[%s1732_s0 + $0x28] sm:$0xff]  ;;  %vm74_vm4 = vcmp.lt.s32.totalorder %v943_v12, 7 }
   0x6   :  { %131 = vmatprep.subr.mxu0 %v853_v6  ;;  %v86_v20 = vld [vmem:[%s1731_s1 + $0x38] sm:$0xff]  ;;  %v29_v23 = vmax.f32 %v21_v17, %v23_v18  ;;  %v85_v24 = vld [vmem:[%s1731_s1 + $0x30] sm:$0xff]  ;;  %v84_v28 = vld [vmem:[%s1731_s1 + $0x28] sm:$0xff]  ;;  %vm995_vm2 = vcmp.ge.s32.totalorder %v41_v26, 1  ;;  %v48_v36 = vand.u32 7, %v973_v27  ;;  %vm1056_vm5 = vcmp.le.s32.totalorder %v41_v26, 6 }
   0x7   :  { %132 = vmatpush1.msra.mxu0 %v852_v7  ;;  %v957_v19 = vmax.f32 %v28_v14, %v30_v15  ;;  %v27_v22 = vld [vmem:[%s1732_s0 + $0x38] sm:$0xff]  ;;  %v83_v30 = vld [vmem:[%s1731_s1 + $0x20] sm:$0xff]  ;;  %v81_v34 = vld [vmem:[%s1731_s1 + $0x10] sm:$0xff] }
   0x8   :  { %133 = vmatprep.subr.mxu0 %v851_v13  ;;  %v31_v25 = vmax.f32 %v25_v21, %v27_v22  ;;  %v82_v32 = vld [vmem:[%s1731_s1 + $0x18] sm:$0xff]  ;;  %v80_v37 = vld [vmem:[%s1731_s1 + $0x8] sm:$0xff]  ;;  %v79_v39 = vld [vmem:[%s1731_s1] sm:$0xff]  ;;  %vm1027_vm3 = vcmp.ge.s32.totalorder %v48_v36, 1  ;;  %vm1081_vm6 = vcmp.le.s32.totalorder %v48_v36, 6 }
   0x9   :  { %134 = vmatpush1.msra.mxu0 %v850_v16  ;;  %v63_v29 = vrot.slane %v957_v19, 7  ;;  %v434_v38 = vld [vmem:[%s1733_s3 + $0xf8] sm:$0xff]  ;;  %v433_v41 = vld [vmem:[%s1733_s3 + $0xf0] sm:$0xff]  ;;  %v72_v44 = vrot.slane %v957_v19, 1  ;;  %v867_v49 = vld [vmem:[%s1731_s1 + $0xa8] sm:$0xff] }
   0xa   :  { %858 = vmatmul.mubr.msk.f32.vlgmr.msra.gmra.mxu0 %vm96_vm0, %v957_v19  ;;  %210 = vmatprep.subr.mxu0 %v86_v20  ;;  %v984_v31 = vmax.f32 %v29_v23, %v31_v25  ;;  %v869_v43 = vld [vmem:[%s1731_s1 + $0xb8] sm:$0xff]  ;;  %v868_v46 = vld [vmem:[%s1731_s1 + $0xb0] sm:$0xff]  ;;  %v432_v50 = vld [vmem:[%s1733_s3 + $0xe8] sm:$0xff] }
   0xb   :  { %211 = vmatpush1.msra.mxu0 %v85_v24  ;;  %173 = vmatprep.mubr.f32.mxu0 %v881_v4  ;;  %v866_v51 = vld [vmem:[%s1731_s1 + $0xa0] sm:$0xff]  ;;  %v865_v54 = vld [vmem:[%s1731_s1 + $0x98] sm:$0xff]  ;;  %v864_v55 = vld [vmem:[%s1731_s1 + $0x90] sm:$0xff] }
   0xc   :  { %212 = vmatprep.subr.mxu0 %v84_v28  ;;  %v64_v33 = vrot.slane %v984_v31, 7  ;;  %v73_v45 = vrot.slane %v984_v31, 1  ;;  %607 = vmatprep.subr.mxu1 %v434_v38  ;;  %v431_v52 = vld [vmem:[%s1733_s3 + $0xe0] sm:$0xff]  ;;  %v863_v58 = vld [vmem:[%s1731_s1 + $0x88] sm:$0xff]  ;;  %v430_v59 = vld [vmem:[%s1733_s3 + $0xd8] sm:$0xff] }
   0xd   :  { %213 = vmatpush1.msra.mxu0 %v83_v30  ;;  %608 = vmatpush1.msra.mxu1 %v433_v41  ;;  %v862_v60 = vld [vmem:[%s1731_s1 + $0x80] sm:$0xff]  ;;  %v429_v61 = vld [vmem:[%s1733_s3 + $0xd0] sm:$0xff]  ;;  %v498_v63 = vld [vmem:[%s1733_s3 + $0x2f8] sm:$0xff] }
   0xe   :  { %859 = vmatmul.mubr.msk.f32.gmra.mxu0 %vm96_vm0, %v984_v31  ;;  %214 = vmatprep.subr.mxu0 %v82_v32  ;;  %v67_v40 = vsel %vm65_vm1, %v64_v33, %v63_v29  ;;  %v66_v48 = vsel %vm65_vm1, %v63_v29, %v64_v33  ;;  %v75_v57 = vsel %vm74_vm4, %v72_v44, %v73_v45  ;;  %v497_v2 = vld [vmem:[%s1733_s3 + $0x2f0] sm:$0xff]  ;;  %v496_v3 = vld [vmem:[%s1733_s3 + $0x2e8] sm:$0xff]  ;;  %v495_v6 = vld [vmem:[%s1733_s3 + $0x2e0] sm:$0xff] }
   0xf   :  { %215 = vmatpush1.msra.mxu0 %v81_v34  ;;  %250 = vmatprep.mubr.f32.mxu0 %v881_v4  ;;  %v68_v42 = vsel %vm995_vm2, %v67_v40, 0.0  ;;  %v69_v53 = vsel %vm1027_vm3, %v66_v48, 0.0  ;;  %v77_v62 = vsel %vm1056_vm5, %v75_v57, 0.0  ;;  %v76_v1 = vsel %vm74_vm4, %v73_v45, %v72_v44  ;;  %v428_v5 = vld [vmem:[%s1733_s3 + $0xc8] sm:$0xff]  ;;  %v427_v7 = vld [vmem:[%s1733_s3 + $0xc0] sm:$0xff]  ;;  %v494_v9 = vld [vmem:[%s1733_s3 + $0x2d8] sm:$0xff] }
  0x10   :  { %216 = vmatprep.subr.mxu0 %v80_v37  ;;  %609 = vmatprep.subr.mxu1 %v432_v50  ;;  %v78_v8 = vsel %vm1081_vm6, %v76_v1, 0.0  ;;  %v493_v10 = vld [vmem:[%s1733_s3 + $0x2d0] sm:$0xff]  ;;  %v426_v11 = vld [vmem:[%s1733_s3 + $0xb8] sm:$0xff]  ;;  %v491_v14 = vld [vmem:[%s1733_s3 + $0x2c0] sm:$0xff] }
  0x11   :  { %217 = vmatpush1.msra.mxu0 %v79_v39  ;;  %610 = vmatpush1.msra.mxu1 %v431_v52  ;;  %v425_v13 = vld [vmem:[%s1733_s3 + $0xb0] sm:$0xff]  ;;  %v424_v15 = vld [vmem:[%s1733_s3 + $0xa8] sm:$0xff]  ;;  %v490_v16 = vld [vmem:[%s1733_s3 + $0x2b8] sm:$0xff] }
  0x12   :  { %860 = vmatmul.mubr.msk.f32.vlgmr.msra.gmra.mxu0 %vm96_vm0, %v68_v42  ;;  %302 = vmatprep.subr.mxu0 %v869_v43  ;;  %v423_v17 = vld [vmem:[%s1733_s3 + $0xa0] sm:$0xff]  ;;  %v489_v18 = vld [vmem:[%s1733_s3 + $0x2b0] sm:$0xff]  ;;  %v422_v19 = vld [vmem:[%s1733_s3 + $0x98] sm:$0xff] }
  0x13   :  { %303 = vmatpush1.msra.mxu0 %v868_v46  ;;  %256 = vmatprep.mubr.f32.mxu0 %v881_v4  ;;  %v488_v20 = vld [vmem:[%s1733_s3 + $0x2a8] sm:$0xff]  ;;  %v421_v21 = vld [vmem:[%s1733_s3 + $0x90] sm:$0xff]  ;;  %v487_v22 = vld [vmem:[%s1733_s3 + $0x2a0] sm:$0xff] }
  0x14   :  { %304 = vmatprep.subr.mxu0 %v867_v49  ;;  %611 = vmatprep.subr.mxu1 %v430_v59  ;;  %v420_v23 = vld [vmem:[%s1733_s3 + $0x88] sm:$0xff]  ;;  %v486_v24 = vld [vmem:[%s1733_s3 + $0x298] sm:$0xff]  ;;  %v419_v25 = vld [vmem:[%s1733_s3 + $0x80] sm:$0xff] }
  0x15   :  { %305 = vmatpush1.msra.mxu0 %v866_v51  ;;  %612 = vmatpush1.msra.mxu1 %v429_v61  ;;  %v485_v26 = vld [vmem:[%s1733_s3 + $0x290] sm:$0xff]  ;;  %v418_v27 = vld [vmem:[%s1733_s3 + $0x78] sm:$0xff]  ;;  %v484_v28 = vld [vmem:[%s1733_s3 + $0x288] sm:$0xff] }
  0x16   :  { %861 = vmatmul.mubr.msk.f32.gmra.mxu0 %vm96_vm0, %v69_v53  ;;  %306 = vmatprep.subr.mxu0 %v865_v54  ;;  %v417_v29 = vld [vmem:[%s1733_s3 + $0x70] sm:$0xff]  ;;  %v483_v30 = vld [vmem:[%s1733_s3 + $0x280] sm:$0xff]  ;;  %v416_v31 = vld [vmem:[%s1733_s3 + $0x68] sm:$0xff] }
  0x17   :  { %307 = vmatpush1.msra.mxu0 %v864_v55  ;;  %342 = vmatprep.mubr.f32.mxu0 %v881_v4  ;;  %v482_v32 = vld [vmem:[%s1733_s3 + $0x278] sm:$0xff]  ;;  %v415_v33 = vld [vmem:[%s1733_s3 + $0x60] sm:$0xff]  ;;  %v481_v34 = vld [vmem:[%s1733_s3 + $0x270] sm:$0xff] }
  0x18   :  { %308 = vmatprep.subr.mxu0 %v863_v58  ;;  %613 = vmatprep.subr.mxu1 %v428_v5  ;;  %v414_v36 = vld [vmem:[%s1733_s3 + $0x58] sm:$0xff]  ;;  %v480_v37 = vld [vmem:[%s1733_s3 + $0x268] sm:$0xff]  ;;  %v413_v38 = vld [vmem:[%s1733_s3 + $0x50] sm:$0xff] }
  0x19   :  { %309 = vmatpush1.msra.mxu0 %v862_v60  ;;  %614 = vmatpush1.msra.mxu1 %v427_v7  ;;  %v479_v39 = vld [vmem:[%s1733_s3 + $0x260] sm:$0xff]  ;;  %v412_v40 = vld [vmem:[%s1733_s3 + $0x48] sm:$0xff]  ;;  %v478_v41 = vld [vmem:[%s1733_s3 + $0x258] sm:$0xff] }
  0x1a   :  { %870 = vmatmul.mubr.msk.f32.vlgmr.msra.gmra.mxu0 %vm96_vm0, %v77_v62  ;;  %684 = vmatprep.subr.mxu0 %v498_v63  ;;  %v411_v42 = vld [vmem:[%s1733_s3 + $0x40] sm:$0xff]  ;;  %v477_v43 = vld [vmem:[%s1733_s3 + $0x250] sm:$0xff]  ;;  %v410_v44 = vld [vmem:[%s1733_s3 + $0x38] sm:$0xff] }
  0x1b   :  { %348 = vmatprep.mubr.f32.mxu0 %v881_v4  ;;  %685 = vmatpush1.msra.mxu0 %v497_v2  ;;  %v492_v4 = vld [vmem:[%s1733_s3 + $0x2c8] sm:$0xff]  ;;  %v409_v46 = vld [vmem:[%s1733_s3 + $0x30] sm:$0xff]  ;;  %v475_v48 = vld [vmem:[%s1733_s3 + $0x240] sm:$0xff] }
  0x1c   :  { %686 = vmatprep.subr.mxu0 %v496_v3  ;;  %615 = vmatprep.subr.mxu1 %v426_v11  ;;  %v476_v45 = vld [vmem:[%s1733_s3 + $0x248] sm:$0xff]  ;;  %v474_v50 = vld [vmem:[%s1733_s3 + $0x238] sm:$0xff]  ;;  %v407_v51 = vld [vmem:[%s1733_s3 + $0x20] sm:$0xff] }
  0x1d   :  { %687 = vmatpush1.msra.mxu0 %v495_v6  ;;  %616 = vmatpush1.msra.mxu1 %v425_v13  ;;  %v408_v49 = vld [vmem:[%s1733_s3 + $0x28] sm:$0xff]  ;;  %v473_v52 = vld [vmem:[%s1733_s3 + $0x230] sm:$0xff]  ;;  %v406_v53 = vld [vmem:[%s1733_s3 + $0x18] sm:$0xff] }
  0x1e   :  { %871 = vmatmul.mubr.msk.f32.gmra.mxu0 %vm96_vm0, %v78_v8  ;;  %688 = vmatprep.subr.mxu0 %v494_v9  ;;  %v472_v54 = vld [vmem:[%s1733_s3 + $0x228] sm:$0xff]  ;;  %v405_v55 = vld [vmem:[%s1733_s3 + $0x10] sm:$0xff]  ;;  %v471_v57 = vld [vmem:[%s1733_s3 + $0x220] sm:$0xff] }
  0x1f   :  { %689 = vmatpush1.msra.mxu0 %v493_v10  ;;  %617 = vmatprep.subr.mxu1 %v424_v15  ;;  %v404_v58 = vld [vmem:[%s1733_s3 + $0x8] sm:$0xff]  ;;  %v470_v59 = vld [vmem:[%s1733_s3 + $0x218] sm:$0xff]  ;;  %v403_v60 = vld [vmem:[%s1733_s3] sm:$0xff] }
  0x20   :  { %690 = vmatprep.subr.mxu0 %v492_v4  ;;  %618 = vmatpush1.msra.mxu1 %v423_v17  ;;  %v469_v61 = vld [vmem:[%s1733_s3 + $0x210] sm:$0xff]  ;;  %v468_v62 = vld [vmem:[%s1733_s3 + $0x208] sm:$0xff]  ;;  %v467_v63 = vld [vmem:[%s1733_s3 + $0x200] sm:$0xff] }
  0x21   :  { %691 = vmatpush1.msra.mxu0 %v491_v14  ;;  %619 = vmatprep.subr.mxu1 %v422_v19  ;;  %v530_v1 = vld [vmem:[%s1733_s3 + $0x3f8] sm:$0xff]  ;;  %v529_v2 = vld [vmem:[%s1733_s3 + $0x3f0] sm:$0xff]  ;;  %v528_v3 = vld [vmem:[%s1733_s3 + $0x3e8] sm:$0xff] }
  0x22   :  { %692 = vmatprep.subr.mxu0 %v490_v16  ;;  %620 = vmatpush1.msra.mxu1 %v421_v21  ;;  %v527_v5 = vld [vmem:[%s1733_s3 + $0x3e0] sm:$0xff]  ;;  %v526_v6 = vld [vmem:[%s1733_s3 + $0x3d8] sm:$0xff]  ;;  %v525_v7 = vld [vmem:[%s1733_s3 + $0x3d0] sm:$0xff] }
  0x23   :  { %693 = vmatpush1.msra.mxu0 %v489_v18  ;;  %621 = vmatprep.subr.mxu1 %v420_v23  ;;  %v466_v8 = vld [vmem:[%s1733_s3 + $0x1f8] sm:$0xff]  ;;  %v524_v9 = vld [vmem:[%s1733_s3 + $0x3c8] sm:$0xff]  ;;  %v465_v10 = vld [vmem:[%s1733_s3 + $0x1f0] sm:$0xff] }
  0x24   :  { %694 = vmatprep.subr.mxu0 %v488_v20  ;;  %622 = vmatpush1.msra.mxu1 %v419_v25  ;;  %v523_v11 = vld [vmem:[%s1733_s3 + $0x3c0] sm:$0xff]  ;;  %v464_v4 = vld [vmem:[%s1733_s3 + $0x1e8] sm:$0xff]  ;;  %v522_v13 = vld [vmem:[%s1733_s3 + $0x3b8] sm:$0xff] }
  0x25   :  { %695 = vmatpush1.msra.mxu0 %v487_v22  ;;  %623 = vmatprep.subr.mxu1 %v418_v27  ;;  %v463_v14 = vld [vmem:[%s1733_s3 + $0x1e0] sm:$0xff]  ;;  %v521_v15 = vld [vmem:[%s1733_s3 + $0x3b0] sm:$0xff]  ;;  %v462_v16 = vld [vmem:[%s1733_s3 + $0x1d8] sm:$0xff] }
  0x26   :  { %696 = vmatprep.subr.mxu0 %v486_v24  ;;  %624 = vmatpush1.msra.mxu1 %v417_v29  ;;  %v520_v17 = vld [vmem:[%s1733_s3 + $0x3a8] sm:$0xff]  ;;  %v461_v18 = vld [vmem:[%s1733_s3 + $0x1d0] sm:$0xff]  ;;  %v519_v19 = vld [vmem:[%s1733_s3 + $0x3a0] sm:$0xff] }
  0x27   :  { %697 = vmatpush1.msra.mxu0 %v485_v26  ;;  %625 = vmatprep.subr.mxu1 %v416_v31  ;;  %v460_v20 = vld [vmem:[%s1733_s3 + $0x1c8] sm:$0xff]  ;;  %v518_v21 = vld [vmem:[%s1733_s3 + $0x398] sm:$0xff]  ;;  %v459_v22 = vld [vmem:[%s1733_s3 + $0x1c0] sm:$0xff] }
  0x28   :  { %698 = vmatprep.subr.mxu0 %v484_v28  ;;  %626 = vmatpush1.msra.mxu1 %v415_v33  ;;  %v517_v23 = vld [vmem:[%s1733_s3 + $0x390] sm:$0xff]  ;;  %v458_v24 = vld [vmem:[%s1733_s3 + $0x1b8] sm:$0xff]  ;;  %v516_v25 = vld [vmem:[%s1733_s3 + $0x388] sm:$0xff] }
  0x29   :  { %699 = vmatpush1.msra.mxu0 %v483_v30  ;;  %627 = vmatprep.subr.mxu1 %v414_v36  ;;  %v457_v26 = vld [vmem:[%s1733_s3 + $0x1b0] sm:$0xff]  ;;  %v515_v27 = vld [vmem:[%s1733_s3 + $0x380] sm:$0xff]  ;;  %v456_v28 = vld [vmem:[%s1733_s3 + $0x1a8] sm:$0xff] }
  0x2a   :  { %700 = vmatprep.subr.mxu0 %v482_v32  ;;  %628 = vmatpush1.msra.mxu1 %v413_v38  ;;  %v514_v29 = vld [vmem:[%s1733_s3 + $0x378] sm:$0xff]  ;;  %v455_v30 = vld [vmem:[%s1733_s3 + $0x1a0] sm:$0xff]  ;;  %v513_v31 = vld [vmem:[%s1733_s3 + $0x370] sm:$0xff] }
  0x2b   :  { %701 = vmatpush1.msra.mxu0 %v481_v34  ;;  %629 = vmatprep.subr.mxu1 %v412_v40  ;;  %v454_v32 = vld [vmem:[%s1733_s3 + $0x198] sm:$0xff]  ;;  %v512_v33 = vld [vmem:[%s1733_s3 + $0x368] sm:$0xff]  ;;  %v453_v34 = vld [vmem:[%s1733_s3 + $0x190] sm:$0xff] }
  0x2c   :  { %702 = vmatprep.subr.mxu0 %v480_v37  ;;  %630 = vmatpush1.msra.mxu1 %v411_v42  ;;  %v511_v36 = vld [vmem:[%s1733_s3 + $0x360] sm:$0xff]  ;;  %v452_v37 = vld [vmem:[%s1733_s3 + $0x188] sm:$0xff]  ;;  %v510_v38 = vld [vmem:[%s1733_s3 + $0x358] sm:$0xff] }
  0x2d   :  { %703 = vmatpush1.msra.mxu0 %v479_v39  ;;  %631 = vmatprep.subr.mxu1 %v410_v44  ;;  %v451_v39 = vld [vmem:[%s1733_s3 + $0x180] sm:$0xff]  ;;  %v509_v40 = vld [vmem:[%s1733_s3 + $0x350] sm:$0xff]  ;;  %v508_v42 = vld [vmem:[%s1733_s3 + $0x348] sm:$0xff] }
  0x2e   :  { %704 = vmatprep.subr.mxu0 %v478_v41  ;;  %632 = vmatpush1.msra.mxu1 %v409_v46  ;;  %v450_v41 = vld [vmem:[%s1733_s3 + $0x178] sm:$0xff]  ;;  %v507_v44 = vld [vmem:[%s1733_s3 + $0x340] sm:$0xff]  ;;  %v557_v35 = vld [vmem:[%s1733_s3 + $0x4d0] sm:$0xff] }
  0x2f   :  { %705 = vmatpush1.msra.mxu0 %v477_v43  ;;  %633 = vmatprep.subr.mxu1 %v408_v49  ;;  %v449_v43 = vld [vmem:[%s1733_s3 + $0x170] sm:$0xff]  ;;  %v506_v46 = vld [vmem:[%s1733_s3 + $0x338] sm:$0xff]  ;;  %v595_v56 = vld [vmem:[%s1735_s4] sm:$0x3] }
  0x30   :  { %706 = vmatprep.subr.mxu0 %v476_v45  ;;  %634 = vmatpush1.msra.mxu1 %v407_v51  ;;  %v448_v45 = vld [vmem:[%s1733_s3 + $0x168] sm:$0xff]  ;;  %v505_v49 = vld [vmem:[%s1733_s3 + $0x330] sm:$0xff]  ;;  %v554_v47 = vld [vmem:[%s1733_s3 + $0x4b8] sm:$0xff] }
  0x31   :  { %707 = vmatpush1.msra.mxu0 %v475_v48  ;;  %635 = vmatprep.subr.mxu1 %v406_v53  ;;  %v447_v48 = vld [vmem:[%s1733_s3 + $0x160] sm:$0xff]  ;;  %v504_v51 = vld [vmem:[%s1733_s3 + $0x328] sm:$0xff] }
  0x32   :  { %708 = vmatprep.subr.mxu0 %v474_v50  ;;  %636 = vmatpush1.msra.mxu1 %v405_v55  ;;  %v446_v50 = vld [vmem:[%s1733_s3 + $0x158] sm:$0xff]  ;;  %v503_v53 = vld [vmem:[%s1733_s3 + $0x320] sm:$0xff] }
  0x33   :  { %709 = vmatpush1.msra.mxu0 %v473_v52  ;;  %637 = vmatprep.subr.mxu1 %v404_v58  ;;  %v445_v52 = vld [vmem:[%s1733_s3 + $0x150] sm:$0xff]  ;;  %v502_v55 = vld [vmem:[%s1733_s3 + $0x318] sm:$0xff] }
  0x34   :  { %710 = vmatprep.subr.mxu0 %v472_v54  ;;  %638 = vmatpush1.msra.mxu1 %v403_v60  ;;  %v444_v54 = vld [vmem:[%s1733_s3 + $0x148] sm:$0xff]  ;;  %v501_v58 = vld [vmem:[%s1733_s3 + $0x310] sm:$0xff] }
  0x35   :  { %711 = vmatpush1.msra.mxu0 %v471_v57  ;;  %639 = vmatprep.subr.mxu1 %v466_v8  ;;  %v443_v57 = vld [vmem:[%s1733_s3 + $0x140] sm:$0xff]  ;;  %v500_v60 = vld [vmem:[%s1733_s3 + $0x308] sm:$0xff] }
  0x36   :  { %712 = vmatprep.subr.mxu0 %v470_v59  ;;  %640 = vmatpush2.msra.mxu1 %v465_v10  ;;  %v442_v59 = vld [vmem:[%s1733_s3 + $0x138] sm:$0xff] }
  0x37   :  { %713 = vmatpush1.msra.mxu0 %v469_v61  ;;  %641 = vmatprep.subr.mxu1 %v464_v4  ;;  %v441_v61 = vld [vmem:[%s1733_s3 + $0x130] sm:$0xff] }
  0x38   :  { %714 = vmatprep.subr.mxu0 %v468_v62  ;;  %642 = vmatpush2.msra.mxu1 %v463_v14  ;;  %v499_v62 = vld [vmem:[%s1733_s3 + $0x300] sm:$0xff]  ;;  %v363_v14 = vsub.s32 0, %v943_v12 }
  0x39   :  { %715 = vmatpush1.msra.mxu0 %v467_v63  ;;  %643 = vmatprep.subr.mxu1 %v462_v16  ;;  %v440_v63 = vld [vmem:[%s1733_s3 + $0x128] sm:$0xff]  ;;  %v359_v16 = vld [vmem:[%s1734_s2] sm:$0x3] }
  0x3a   :  { %716 = vmatprep.subr.mxu0 %v530_v1  ;;  %644 = vmatpush2.msra.mxu1 %v461_v18  ;;  %v439_v1 = vld [vmem:[%s1733_s3 + $0x120] sm:$0xff] }
  0x3b   :  { %717 = vmatpush2.msra.mxu0 %v529_v2  ;;  %645 = vmatprep.subr.mxu1 %v460_v20  ;;  %v438_v2 = vld [vmem:[%s1733_s3 + $0x118] sm:$0xff]  ;;  %v364_v20 = vrot.slane %v359_v16, %v363_v14 }
  0x3c   :  { %718 = vmatprep.subr.mxu0 %v528_v3  ;;  %646 = vmatpush2.msra.mxu1 %v459_v22  ;;  %v437_v3 = vld [vmem:[%s1733_s3 + $0x110] sm:$0xff] }
  0x3d   :  { %719 = vmatpush2.msra.mxu0 %v527_v5  ;;  %647 = vmatprep.subr.mxu1 %v458_v24  ;;  %v436_v5 = vld [vmem:[%s1733_s3 + $0x108] sm:$0xff] }
  0x3e   :  { %720 = vmatprep.subr.mxu0 %v526_v6  ;;  %648 = vmatpush2.msra.mxu1 %v457_v26  ;;  %v435_v6 = vld [vmem:[%s1733_s3 + $0x100] sm:$0xff] }
  0x3f   :  { %721 = vmatpush2.msra.mxu0 %v525_v7  ;;  %649 = vmatprep.subr.mxu1 %v456_v28  ;;  %v562_v7 = vld [vmem:[%s1733_s3 + $0x4f8] sm:$0xff] }
  0x40   :  { %722 = vmatprep.subr.mxu0 %v524_v9  ;;  %650 = vmatpush2.msra.mxu1 %v455_v30 }
  0x41   :  { %723 = vmatpush2.msra.mxu0 %v523_v11  ;;  %651 = vmatprep.subr.mxu1 %v454_v32 }
  0x42   :  { %724 = vmatprep.subr.mxu0 %v522_v13  ;;  %652 = vmatpush2.msra.mxu1 %v453_v34 }
  0x43   :  { %725 = vmatpush2.msra.mxu0 %v521_v15  ;;  %653 = vmatprep.subr.mxu1 %v452_v37 }
  0x44   :  { %726 = vmatprep.subr.mxu0 %v520_v17  ;;  %654 = vmatpush2.msra.mxu1 %v451_v39  ;;  %v367_v17 = vsub.s32 1, %v943_v12 }
  0x45   :  { %727 = vmatpush2.msra.mxu0 %v519_v19  ;;  %655 = vmatprep.subr.mxu1 %v450_v41 }
  0x46   :  { %728 = vmatprep.subr.mxu0 %v518_v21  ;;  %656 = vmatpush2.msra.mxu1 %v449_v43  ;;  %v368_v24 = vrot.slane %v359_v16, %v367_v17  ;;  %v541_v16 = vld [vmem:[%s1733_s3 + $0x450] sm:$0xff] }
  0x47   :  { %729 = vmatpush2.msra.mxu0 %v517_v23  ;;  %657 = vmatprep.subr.mxu1 %v448_v45 }
  0x48   :  { %730 = vmatprep.subr.mxu0 %v516_v25  ;;  %658 = vmatpush2.msra.mxu1 %v447_v48 }
  0x49   :  { %731 = vmatpush2.msra.mxu0 %v515_v27  ;;  %659 = vmatprep.subr.mxu1 %v446_v50 }
  0x4a   :  { %732 = vmatprep.subr.mxu0 %v514_v29  ;;  %660 = vmatpush2.msra.mxu1 %v445_v52  ;;  %v561_v52 = vld [vmem:[%s1733_s3 + $0x4f0] sm:$0xff] }
  0x4b   :  { %733 = vmatpush2.msra.mxu0 %v513_v31  ;;  %661 = vmatprep.subr.mxu1 %v444_v54  ;;  %v560_v54 = vld [vmem:[%s1733_s3 + $0x4e8] sm:$0xff] }
  0x4c   :  { %734 = vmatprep.subr.mxu0 %v512_v33  ;;  %662 = vmatpush2.msra.mxu1 %v443_v57 }
  0x4d   :  { %735 = vmatpush2.msra.mxu0 %v511_v36  ;;  %663 = vmatprep.subr.mxu1 %v442_v59  ;;  %v558_v59 = vld [vmem:[%s1733_s3 + $0x4d8] sm:$0xff] }
  0x4e   :  { %736 = vmatprep.subr.mxu0 %v510_v38  ;;  %664 = vmatpush2.msra.mxu1 %v441_v61 }
  0x4f   :  { %737 = vmatpush2.msra.mxu0 %v509_v40  ;;  %665 = vmatprep.subr.mxu1 %v440_v63 }
  0x50   :  { %738 = vmatprep.subr.mxu0 %v508_v42  ;;  %666 = vmatpush2.msra.mxu1 %v439_v1  ;;  %v555_v1 = vld [vmem:[%s1733_s3 + $0x4c0] sm:$0xff] }
  0x51   :  { %739 = vmatpush2.msra.mxu0 %v507_v44  ;;  %667 = vmatprep.subr.mxu1 %v438_v2  ;;  %v553_v2 = vld [vmem:[%s1733_s3 + $0x4b0] sm:$0xff] }
  0x52   :  { %740 = vmatprep.subr.mxu0 %v506_v46  ;;  %668 = vmatpush2.msra.mxu1 %v437_v3  ;;  %v552_v3 = vld [vmem:[%s1733_s3 + $0x4a8] sm:$0xff] }
  0x53   :  { %741 = vmatpush2.msra.mxu0 %v505_v49  ;;  %669 = vmatprep.subr.mxu1 %v436_v5  ;;  %v551_v5 = vld [vmem:[%s1733_s3 + $0x4a0] sm:$0xff] }
  0x54   :  { %742 = vmatprep.subr.mxu0 %v504_v51  ;;  %670 = vmatpush2.msra.mxu1 %v435_v6  ;;  %v550_v6 = vld [vmem:[%s1733_s3 + $0x498] sm:$0xff] }
  0x55   :  { %743 = vmatpush2.msra.mxu0 %v503_v53  ;;  %761 = vmatprep.subr.mxu1 %v562_v7  ;;  %v549_v7 = vld [vmem:[%s1733_s3 + $0x490] sm:$0xff] }
  0x56   :  { %744 = vmatprep.subr.mxu0 %v502_v55 }
  0x57   :  { %745 = vmatpush2.msra.mxu0 %v501_v58  ;;  %v559_v58 = vld [vmem:[%s1733_s3 + $0x4e0] sm:$0xff] }
  0x58   :  { %746 = vmatprep.subr.mxu0 %v500_v60 }
  0x59   :  { %747 = vmatpush2.msra.mxu0 %v499_v62  ;;  %v556_v62 = vld [vmem:[%s1733_s3 + $0x4c8] sm:$0xff] }
  0xca   :  { %v169_v8 = vpop.f32.mrf.mxu0 }
  0xcc   :  { %v171_v9 = vpop.f32.mrf.mxu0 }
  0xce   :  { %v175_v10 = vpop.f32.mrf.mxu0 }
  0xd0   :  { %v177_v11 = vpop.f32.mrf.mxu0 }
  0xd2   :  { %v252_v4 = vpop.f32.mrf.mxu0 }
  0xd3   :  { %v253_v19 = vadd.f32 %v252_v4, %v169_v8  ;;  %v548_v8 = vld [vmem:[%s1733_s3 + $0x488] sm:$0xff] }
  0xd4   :  { %v254_v13 = vpop.f32.mrf.mxu0  ;;  %v544_v4 = vld [vmem:[%s1733_s3 + $0x468] sm:$0xff] }
  0xd5   :  { %v255_v22 = vadd.f32 %v254_v13, %v171_v9  ;;  %v547_v9 = vld [vmem:[%s1733_s3 + $0x480] sm:$0xff] }
  0xd6   :  { %v258_v15 = vpop.f32.mrf.mxu0  ;;  %v543_v13 = vld [vmem:[%s1733_s3 + $0x460] sm:$0xff] }
  0xd7   :  { %v259_v26 = vadd.f32 %v258_v15, %v175_v10  ;;  %v546_v10 = vld [vmem:[%s1733_s3 + $0x478] sm:$0xff] }
  0xd8   :  { %v260_v18 = vpop.f32.mrf.mxu0  ;;  %v542_v15 = vld [vmem:[%s1733_s3 + $0x458] sm:$0xff] }
  0xd9   :  { %v261_v32 = vadd.f32 %v260_v18, %v177_v11  ;;  %v545_v11 = vld [vmem:[%s1733_s3 + $0x470] sm:$0xff]  ;;  %v540_v18 = vld [vmem:[%s1733_s3 + $0x448] sm:$0xff] }
  0xda   :  { %v344_v21 = vpop.f32.mrf.mxu0 }
  0xdb   :  { %v355_v23 = vadd.f32 %v344_v21, %v253_v19  ;;  %v539_v19 = vld [vmem:[%s1733_s3 + $0x440] sm:$0xff]  ;;  %v537_v21 = vld [vmem:[%s1733_s3 + $0x430] sm:$0xff] }
  0xdc   :  { %v346_v25 = vpop.f32.mrf.mxu0 }
  0xdd   :  { %v371_v27 = vadd.f32 %v364_v20, %v355_v23  ;;  %v356_v28 = vadd.f32 %v346_v25, %v255_v22  ;;  %v536_v22 = vld [vmem:[%s1733_s3 + $0x428] sm:$0xff]  ;;  %v535_v23 = vld [vmem:[%s1733_s3 + $0x420] sm:$0xff]  ;;  %v533_v25 = vld [vmem:[%s1733_s3 + $0x410] sm:$0xff] }
  0xde   :  { %v350_v29 = vpop.f32.mrf.mxu0 }
  0xdf   :  { %v372_v30 = vadd.f32 %v368_v24, %v356_v28  ;;  %v357_v31 = vadd.f32 %v350_v29, %v259_v26  ;;  %v375_v34 = vmax.f32 %v371_v27, 0.0  ;;  %v532_v26 = vld [vmem:[%s1733_s3 + $0x408] sm:$0xff]  ;;  %v531_v27 = vld [vmem:[%s1733_s3 + $0x400] sm:$0xff]  ;;  %v594_v28 = vld [vmem:[%s1733_s3 + $0x5f8] sm:$0xff] }
  0xe0   :  { %v352_v33 = vpop.f32.mrf.mxu0  ;;  %v593_v29 = vld [vmem:[%s1733_s3 + $0x5f0] sm:$0xff] }
  0xe1   :  { %v1467_v36 = vmax.f32 %v372_v30, 0.0  ;;  %v373_v37 = vadd.f32 %v364_v20, %v357_v31  ;;  %v358_v38 = vadd.f32 %v352_v33, %v261_v32  ;;  %v391_v41 = vrot.slane %v375_v34, 1  ;;  %v538_v20 = vld [vmem:[%s1733_s3 + $0x438] sm:$0xff]  ;;  %v592_v30 = vld [vmem:[%s1733_s3 + $0x5e8] sm:$0xff]  ;;  %v591_v31 = vld [vmem:[%s1733_s3 + $0x5e0] sm:$0xff] }
  0xe2   :  { %v379_v50 = vrot.slane %v375_v34, 7  ;;  %v590_v32 = vld [vmem:[%s1733_s3 + $0x5d8] sm:$0xff]  ;;  %v589_v33 = vld [vmem:[%s1733_s3 + $0x5d0] sm:$0xff] }
  0xe3   :  { %v377_v39 = vmax.f32 %v373_v37, 0.0  ;;  %748 = vmatprep.mubr.f32.mxu0 %v1467_v36  ;;  %v374_v40 = vadd.f32 %v368_v24, %v358_v38  ;;  %v380_v48 = vrot.slane %v1467_v36, 7  ;;  %v392_v60 = vrot.slane %v1467_v36, 1  ;;  %v534_v24 = vld [vmem:[%s1733_s3 + $0x418] sm:$0xff]  ;;  %v587_v37 = vld [vmem:[%s1733_s3 + $0x5c0] sm:$0xff] }
  0xe4   :  { %749 = vmatmul.mubr.f32.vlgmr.msra.gmra.mxu0 %v375_v34  ;;  %v588_v34 = vld [vmem:[%s1733_s3 + $0x5c8] sm:$0xff]  ;;  %v586_v38 = vld [vmem:[%s1733_s3 + $0x5b8] sm:$0xff]  ;;  %v600_v36 = vrot.slane %v595_v56, %v363_v14 }
  0xe5   :  { %v393_v42 = vrot.slane %v377_v39, 1  ;;  %v1470_v43 = vmax.f32 %v374_v40, 0.0  ;;  %v381_v44 = vrot.slane %v377_v39, 7  ;;  %v584_v40 = vld [vmem:[%s1733_s3 + $0x5a8] sm:$0xff] }
  0xe7   :  { %v1474_v45 = vsel %vm74_vm4, %v391_v41, %v393_v42  ;;  %v1478_v46 = vsel %vm74_vm4, %v393_v42, %v391_v41  ;;  %754 = vmatprep.mubr.f32.mxu0 %v1470_v43  ;;  %v382_v49 = vrot.slane %v1470_v43, 7  ;;  %v385_v53 = vsel %vm65_vm1, %v381_v44, %v379_v50  ;;  %v583_v41 = vld [vmem:[%s1733_s3 + $0x5a0] sm:$0xff]  ;;  %v582_v42 = vld [vmem:[%s1733_s3 + $0x598] sm:$0xff] }
  0xe8   :  { %755 = vmatmul.mubr.f32.gmra.mxu0 %v377_v39  ;;  %v394_v55 = vrot.slane %v1470_v43, 1  ;;  %v383_v61 = vsel %vm65_vm1, %v379_v50, %v381_v44  ;;  %v585_v39 = vld [vmem:[%s1733_s3 + $0x5b0] sm:$0xff]  ;;  %v578_v50 = vld [vmem:[%s1733_s3 + $0x578] sm:$0xff] }
  0xe9   :  { %v386_v51 = vsel %vm65_vm1, %v382_v49, %v380_v48  ;;  %v384_v57 = vsel %vm65_vm1, %v380_v48, %v382_v49  ;;  %v581_v44 = vld [vmem:[%s1733_s3 + $0x590] sm:$0xff]  ;;  %v580_v48 = vld [vmem:[%s1733_s3 + $0x588] sm:$0xff]  ;;  %v579_v49 = vld [vmem:[%s1733_s3 + $0x580] sm:$0xff] }
  0xea   :  { %872 = vmatprep.mubr.msk.f32.mxu1 %vm995_vm2, %v386_v51  ;;  %v396_v63 = vsel %vm74_vm4, %v392_v60, %v394_v55  ;;  %v577_v51 = vld [vmem:[%s1733_s3 + $0x570] sm:$0xff] }
  0xeb   :  { %873 = vmatmul.mubr.msk.f32.vlgmr.msra.gmra.mxu1 %vm995_vm2, %v385_v53  ;;  %v575_v53 = vld [vmem:[%s1733_s3 + $0x560] sm:$0xff] }
  0xec   :  { %762 = vmatpush1.msra.mxu1 %v561_v52  ;;  %874 = vmatprep.mubr.msk.f32.mxu1 %vm1027_vm3, %v384_v57  ;;  %v576_v52 = vld [vmem:[%s1733_s3 + $0x568] sm:$0xff]  ;;  %v573_v57 = vld [vmem:[%s1733_s3 + $0x550] sm:$0xff] }
  0xed   :  { %763 = vmatprep.subr.mxu1 %v560_v54  ;;  %v574_v54 = vld [vmem:[%s1733_s3 + $0x558] sm:$0xff] }
  0xee   :  { %764 = vmatpush1.msra.mxu1 %v559_v58  ;;  %v572_v58 = vld [vmem:[%s1733_s3 + $0x548] sm:$0xff] }
  0xef   :  { %765 = vmatprep.subr.mxu1 %v558_v59  ;;  %875 = vmatmul.mubr.msk.f32.gmra.mxu1 %vm1027_vm3, %v383_v61  ;;  %v571_v59 = vld [vmem:[%s1733_s3 + $0x540] sm:$0xff]  ;;  %v569_v61 = vld [vmem:[%s1733_s3 + $0x530] sm:$0xff] }
  0xf0   :  { %766 = vmatpush1.msra.mxu1 %v557_v35  ;;  %876 = vmatprep.mubr.msk.f32.mxu1 %vm1056_vm5, %v396_v63  ;;  %v570_v35 = vld [vmem:[%s1733_s3 + $0x538] sm:$0xff]  ;;  %v567_v63 = vld [vmem:[%s1733_s3 + $0x520] sm:$0xff] }
  0xf1   :  { %767 = vmatprep.subr.mxu1 %v556_v62  ;;  %v568_v62 = vld [vmem:[%s1733_s3 + $0x528] sm:$0xff] }
  0xf2   :  { %768 = vmatpush1.msra.mxu1 %v555_v1  ;;  %v566_v1 = vld [vmem:[%s1733_s3 + $0x518] sm:$0xff] }
  0xf3   :  { %769 = vmatprep.subr.mxu1 %v554_v47  ;;  %v565_v47 = vld [vmem:[%s1733_s3 + $0x510] sm:$0xff] }
  0xf4   :  { %770 = vmatpush1.msra.mxu1 %v553_v2  ;;  %v564_v2 = vld [vmem:[%s1733_s3 + $0x508] sm:$0xff] }
  0xf5   :  { %771 = vmatprep.subr.mxu1 %v552_v3  ;;  %v563_v3 = vld [vmem:[%s1733_s3 + $0x500] sm:$0xff] }
  0xf6   :  { %772 = vmatpush1.msra.mxu1 %v551_v5  ;;  %v398_v5 = vsel %vm74_vm4, %v394_v55, %v392_v60  ;;  %v604_v55 = vrot.slane %v595_v56, %v367_v17 }
  0xf7   :  { %773 = vmatprep.subr.mxu1 %v550_v6 }
  0xf8   :  { %774 = vmatpush1.msra.mxu1 %v549_v7 }
  0xf9   :  { %775 = vmatprep.subr.mxu1 %v548_v8 }
  0xfa   :  { %776 = vmatpush1.msra.mxu1 %v547_v9 }
  0xfb   :  { %777 = vmatprep.subr.mxu1 %v546_v10 }
  0xfc   :  { %778 = vmatpush1.msra.mxu1 %v545_v11 }
  0xfd   :  { %779 = vmatprep.subr.mxu1 %v544_v4 }
  0xfe   :  { %780 = vmatpush1.msra.mxu1 %v543_v13 }
  0xff   :  { %781 = vmatprep.subr.mxu1 %v542_v15 }
 0x100   :  { %782 = vmatpush1.msra.mxu1 %v541_v16 }
 0x101   :  { %783 = vmatprep.subr.mxu1 %v540_v18 }
 0x102   :  { %784 = vmatpush1.msra.mxu1 %v539_v19 }
 0x103   :  { %785 = vmatprep.subr.mxu1 %v538_v20 }
 0x104   :  { %786 = vmatpush1.msra.mxu1 %v537_v21 }
 0x105   :  { %787 = vmatprep.subr.mxu1 %v536_v22 }
 0x106   :  { %788 = vmatpush1.msra.mxu1 %v535_v23 }
 0x107   :  { %789 = vmatprep.subr.mxu1 %v534_v24 }
 0x108   :  { %790 = vmatpush1.msra.mxu1 %v533_v25 }
 0x109   :  { %791 = vmatprep.subr.mxu1 %v532_v26 }
 0x10a   :  { %792 = vmatpush1.msra.mxu1 %v531_v27 }
 0x10b   :  { %793 = vmatprep.subr.mxu1 %v594_v28 }
 0x10c   :  { %794 = vmatpush2.msra.mxu1 %v593_v29 }
 0x10d   :  { %795 = vmatprep.subr.mxu1 %v592_v30 }
 0x10e   :  { %796 = vmatpush2.msra.mxu1 %v591_v31 }
 0x10f   :  { %797 = vmatprep.subr.mxu1 %v590_v32 }
 0x110   :  { %798 = vmatpush2.msra.mxu1 %v589_v33 }
 0x111   :  { %799 = vmatprep.subr.mxu1 %v588_v34 }
 0x112   :  { %800 = vmatpush2.msra.mxu1 %v587_v37 }
 0x113   :  { %801 = vmatprep.subr.mxu1 %v586_v38 }
 0x114   :  { %802 = vmatpush2.msra.mxu1 %v585_v39 }
 0x115   :  { %803 = vmatprep.subr.mxu1 %v584_v40 }
 0x116   :  { %804 = vmatpush2.msra.mxu1 %v583_v41 }
 0x117   :  { %805 = vmatprep.subr.mxu1 %v582_v42 }
 0x118   :  { %806 = vmatpush2.msra.mxu1 %v581_v44 }
 0x119   :  { %807 = vmatprep.subr.mxu1 %v580_v48 }
 0x11a   :  { %808 = vmatpush2.msra.mxu1 %v579_v49 }
 0x11b   :  { %809 = vmatprep.subr.mxu1 %v578_v50 }
 0x11c   :  { %810 = vmatpush2.msra.mxu1 %v577_v51 }
 0x11d   :  { %811 = vmatprep.subr.mxu1 %v576_v52 }
 0x11e   :  { %812 = vmatpush2.msra.mxu1 %v575_v53 }
 0x11f   :  { %813 = vmatprep.subr.mxu1 %v574_v54 }
 0x120   :  { %814 = vmatpush2.msra.mxu1 %v573_v57 }
 0x121   :  { %815 = vmatprep.subr.mxu1 %v572_v58 }
 0x122   :  { %816 = vmatpush2.msra.mxu1 %v571_v59 }
 0x123   :  { %817 = vmatprep.subr.mxu1 %v570_v35 }
 0x124   :  { %818 = vmatpush2.msra.mxu1 %v569_v61 }
 0x125   :  { %819 = vmatprep.subr.mxu1 %v568_v62 }
 0x126   :  { %820 = vmatpush2.msra.mxu1 %v567_v63 }
 0x127   :  { %821 = vmatprep.subr.mxu1 %v566_v1 }
 0x128   :  { %822 = vmatpush2.msra.mxu1 %v565_v47 }
 0x129   :  { %823 = vmatprep.subr.mxu1 %v564_v2 }
 0x12a   :  { %824 = vmatpush2.msra.mxu1 %v563_v3 }
 0x12b   :  { %877 = vmatmul.mubr.msk.f32.vlgmr.msra.gmra.mxu1 %vm1056_vm5, %v1474_v45 }
 0x12c   :  { %878 = vmatprep.mubr.msk.f32.mxu1 %vm1081_vm6, %v398_v5 }
 0x12f   :  { %879 = vmatmul.mubr.msk.f32.gmra.mxu1 %vm1081_vm6, %v1478_v46 }
 0x1a4   :  { %v750_v43 = vpop.f32.mrf.mxu0 }
 0x1a6   :  { %v752_v8 = vpop.f32.mrf.mxu0 }
 0x1a8   :  { %v756_v11 = vpop.f32.mrf.mxu0 }
 0x1aa   :  { %v758_v21 = vpop.f32.mrf.mxu0 }
 0x1ab   :  { %v673_v6 = vpop.f32.mrf.mxu1 }
 0x1ac   :  { %v674_v7 = vadd.f32 %v673_v6, %v600_v36 }
 0x1ad   :  { %v675_v45 = vpop.f32.mrf.mxu1 }
 0x1ae   :  { %v676_v9 = vadd.f32 %v675_v45, %v604_v55  ;;  %v751_v46 = vadd.f32 %v750_v43, %v674_v7 }
 0x1af   :  { %v679_v60 = vpop.f32.mrf.mxu1 }
 0x1b0   :  { %v680_v0 = vadd.f32 %v679_v60, %v600_v36  ;;  %v753_v16 = vadd.f32 %v752_v8, %v676_v9 }
 0x1b1   :  { %v681_v10 = vpop.f32.mrf.mxu1 }
 0x1b2   :  { %v682_v13 = vadd.f32 %v681_v10, %v604_v55  ;;  %v757_v14 = vadd.f32 %v756_v11, %v680_v0 }
 0x1b4   :  { %v759_v23 = vadd.f32 %v758_v21, %v682_v13 }
 0x1eb   :  { %v827_v4 = vpop.f32.mrf.mxu1 }
 0x1ec   :  { %v828_v15 = vadd.f32 %v827_v4, %v751_v46 }
 0x1ed   :  { %v829_v18 = vpop.f32.mrf.mxu1 }
 0x1ee   :  { %v838_v19 = vmax.f32 %v828_v15, 0.0  ;;  %v830_v20 = vadd.f32 %v829_v18, %v753_v16 }
 0x1ef   :  { %v833_v22 = vpop.f32.mrf.mxu1 }
 0x1f0   :  { %842 = vst [vmem:[%s1736_s5] sm:$0xff] %v838_v19  ;;  %v839_v12 = vmax.f32 %v830_v20, 0.0  ;;  %v834_v17 = vadd.f32 %v833_v22, %v757_v14 }
 0x1f1   :  { %v835_v24 = vpop.f32.mrf.mxu1 }
 0x1f2   :  { %843 = vst [vmem:[%s1736_s5 + $0x8] sm:$0xff] %v839_v12  ;;  %v840_v25 = vmax.f32 %v834_v17, 0.0  ;;  %v836_v26 = vadd.f32 %v835_v24, %v759_v23 }
 0x1f4   :  { %844 = vst [vmem:[%s1736_s5 + $0x10] sm:$0xff] %v840_v25  ;;  %v841_v27 = vmax.f32 %v836_v26, 0.0 }
 0x1f6   :  { %845 = vst [vmem:[%s1736_s5 + $0x18] sm:$0xff] %v841_v27 }

</bundles_post_ra>
